<compile_context>
chip_gen: v7x
topology: tpu7x:2x2x1
jax: 0.10.0
libtpu: 0.0.40
codegen_flags: <defaults>
</compile_context>

<pallas_src>
import functools

import jax
import jax.numpy as jnp
from jax import lax
from jax.experimental import pallas as pl
from jax.experimental.pallas import tpu as pltpu


_OUT_SUBLANES = 8      # f32 sublane tile for the per-split output block
_OUT_LANES = 128


def _round_up(x, m):
    return (x + m - 1) // m * m


def _hw_config():
    """(core_splits, vmem_limit_bytes, per-input f32-equivalent block bytes)."""
    try:
        kind = jax.devices()[0].device_kind.lower()
    except Exception:  # pragma: no cover - conservative fallback
        kind = ""
    if "v7" in kind:
        # 2 TensorCores/chip but only 64 MiB VMEM per TC -> smaller blocks.
        return 2, 48 * 1024 * 1024, 2 << 20
    if ("v2" in kind) or ("v3" in kind):
        # Old parts with ~16 MiB VMEM.
        return 1, 12 * 1024 * 1024, 1 << 20
    # v4 / v5p are megacore (2 TCs); v5e / v6e are single-TC. All have 128 MiB VMEM.
    splits = 2 if (("v4" in kind) or ("v5p" in kind)) else 1
    return splits, 64 * 1024 * 1024, 4 << 20


def _choose_block_rows(rows_padded, feat, sublane, target_f32_bytes):
    """Batch-tile row count: budget by the f32 footprint (bounds temporaries too)."""
    rows = max(sublane, (target_f32_bytes // max(1, feat * 4)) // sublane * sublane)
    rows = min(rows, rows_padded)          # rows_padded is already sublane-aligned
    return int(rows)


def _triplet_loss_kernel(a_ref, p_ref, n_ref, o_ref, acc_ref, *,
                         margin, eps, true_batch, block_rows, feat, groups,
                         tiles_per_split):
    c = pl.program_id(0)                   # 'parallel' core-split axis
    i = pl.program_id(1)                   # 'arbitrary' reduction axis (batch tiles)
    t = c * tiles_per_split + i            # unclamped linear tile index

    @pl.when(i == 0)
    def _():
        acc_ref[...] = jnp.zeros_like(acc_ref)
        o_ref[...] = jnp.zeros_like(o_ref)

    a = a_ref[...].astype(jnp.float32)
    p = p_ref[...].astype(jnp.float32)
    n = n_ref[...].astype(jnp.float32)

    ae = a + eps                           # eps hoisted: one add, reused twice
    dpos = ae - p
    dneg = ae - n
    sq_pos = dpos * dpos
    sq_neg = dneg * dneg

    if groups == 1:
        pos2 = jnp.sum(sq_pos, axis=-1, keepdims=True)           # (TB, 1)
        neg2 = jnp.sum(sq_neg, axis=-1, keepdims=True)           # (TB, 1)
    else:
        # Lane-packed path: each row holds `groups` triples of `feat` features.
        # Segmented last-axis reduce done as a matmul on the (idle) MXU.
        full = groups * feat
        k_idx = lax.broadcasted_iota(jnp.int32, (full, groups), 0)
        j_idx = lax.broadcasted_iota(jnp.int32, (full, groups), 1)
        lo = j_idx * feat
        seg = jnp.logical_and(k_idx >= lo, k_idx < lo + feat).astype(jnp.float32)
        pos2 = jnp.dot(sq_pos, seg, preferred_element_type=jnp.float32)  # (TB, g)
        neg2 = jnp.dot(sq_neg, seg, preferred_element_type=jnp.float32)  # (TB, g)

    loss = jnp.maximum(jnp.sqrt(pos2) - jnp.sqrt(neg2) + margin, 0.0)

    # Only tiles that can contain padded / out-of-range triples pay for masking.
    triples_per_tile = block_rows * groups
    needs_mask = (t + 1) * triples_per_tile > true_batch

    @pl.when(needs_mask)
    def _():
        r = lax.broadcasted_iota(jnp.int32, loss.shape, 0)
        j = lax.broadcasted_iota(jnp.int32, loss.shape, 1)
        idx = (t * block_rows + r) * groups + j       # global triple index
        masked = jnp.where(idx < true_batch, loss, 0.0)
        acc_ref[...] += jnp.sum(masked, keepdims=True)

    @pl.when(jnp.logical_not(needs_mask))
    def _():
        acc_ref[...] += jnp.sum(loss, keepdims=True)

    # Single output writeback per split (block is resident across the i-loop).
    @pl.when(i == pl.num_programs(1) - 1)
    def _():
        o_ref[...] += acc_ref[...]


def triplet_loss(anchor, positive, negative, margin=1.0, eps=1e-6):
    """Triplet margin loss over (B, D) embeddings.

    Purely HBM-bandwidth bound: for best performance feed bf16 embeddings
    (the kernel upcasts to f32 internally, so accuracy is preserved).
    """
    assert anchor.shape == positive.shape == negative.shape
    assert anchor.ndim == 2, "expected (B, D) embeddings"
    B, D = anchor.shape
    assert B >= 1
    itemsize = jnp.dtype(anchor.dtype).itemsize

    splits, vmem_limit, target_bytes = _hw_config()

    # Lane packing for small feature dims: fold g triples into one 128-lane row.
    g = max(1, 128 // D) if D < 128 else 1
    F = g * D
    sub = 16 if itemsize == 2 else 8       # bf16 packs 16 rows per vreg

    def _pack(x):
        if g > 1:
            pad_b = _round_up(B, g) - B
            if pad_b:
                x = jnp.pad(x, ((0, pad_b), (0, 0)))
            x = x.reshape(-1, F)
        rows = x.shape[0]
        pad_r = _round_up(rows, sub) - rows
        if pad_r:
            x = jnp.pad(x, ((0, pad_r), (0, 0)))
        return x

    a, p, n = _pack(anchor), _pack(positive), _pack(negative)
    rows_padded = a.shape[0]

    tb = _choose_block_rows(rows_padded, F, sub, target_bytes)
    total_tiles = -(-rows_padded // tb)
    tiles_per_split = -(-total_tiles // splits)

    kernel = functools.partial(
        _triplet_loss_kernel,
        margin=float(margin), eps=float(eps), true_batch=int(B),
        block_rows=int(tb), feat=int(D), groups=int(g),
        tiles_per_split=int(tiles_per_split))

    def in_map(c, i):
        # Clamp so we never request a block fully outside the array; the
        # in-kernel triple-index mask zeroes out any clamped re-read.
        return (jnp.minimum(c * tiles_per_split + i, total_tiles - 1), 0)

    in_spec = pl.BlockSpec((tb, F), in_map)
    out_spec = pl.BlockSpec((_OUT_SUBLANES, _OUT_LANES), lambda c, i: (c, 0))

    out = pl.pallas_call(
        kernel,
        out_shape=jax.ShapeDtypeStruct(
            (splits * _OUT_SUBLANES, _OUT_LANES), jnp.float32),
        grid_spec=pltpu.PrefetchScalarGridSpec(
            num_scalar_prefetch=0,
            grid=(splits, tiles_per_split),
            in_specs=[in_spec, in_spec, in_spec],
            out_specs=out_spec,
            scratch_shapes=[pltpu.VMEM((1, 1), jnp.float32)]),
        compiler_params=pltpu.CompilerParams(
            dimension_semantics=("parallel", "arbitrary"),
            vmem_limit_bytes=int(vmem_limit)),
    )(a, p, n)

    # Element [0, 0] of split c's (8,128) block holds that split's partial sum.
    partials = out.reshape(splits, _OUT_SUBLANES, _OUT_LANES)[:, 0, 0]
    return jnp.sum(partials) / B


def triplet_loss_ref(anchor, positive, negative, margin=1.0, eps=1e-6):
    # Pure-JAX reference mirroring torch.nn.functional.pairwise_distance.
    pos = jnp.sqrt(jnp.sum((anchor - positive + eps) ** 2, axis=-1))
    neg = jnp.sqrt(jnp.sum((anchor - negative + eps) ** 2, axis=-1))
    return jnp.mean(jnp.maximum(pos - neg + margin, 0.0))


if __name__ == "__main__":
    key = jax.random.PRNGKey(0)
    k_a, k_p, k_n = jax.random.split(key, 3)

    B, D = 8, 32  # small embedding batch
    anchor = jax.random.normal(k_a, (B, D), dtype=jnp.float32)
    positive = jax.random.normal(k_p, (B, D), dtype=jnp.float32)
    negative = jax.random.normal(k_n, (B, D), dtype=jnp.float32)

    out = triplet_loss(anchor, positive, negative, margin=1.0)
    out = jax.block_until_ready(out)

    ref = triplet_loss_ref(anchor, positive, negative, margin=1.0)
    assert jnp.allclose(out, ref, atol=1e-5, rtol=1e-5), (out, ref)

    print("KERNEL_OK")
</pallas_src>

<mosaic_0001>
module attributes {stable_mosaic.version = 11 : i64} {
  func.func @_triplet_loss_kernel(%arg0: i32, %arg1: i32, %arg2: memref<8x128xf32, #tpu.memory_space<vmem>>, %arg3: memref<8x128xf32, #tpu.memory_space<vmem>>, %arg4: memref<8x128xf32, #tpu.memory_space<vmem>>, %arg5: memref<8x128xf32, #tpu.memory_space<vmem>>, %arg6: memref<1x1xf32, #tpu.memory_space<vmem>>) attributes {dimension_semantics = [#tpu.dimension_semantics<parallel>, #tpu.dimension_semantics<arbitrary>], iteration_bounds = array<i64: 1, 1>, scalar_prefetch = 0 : i64, scratch_operands = 1 : i64, tpu.core_type = #tpu.core_type<tc>, window_params = [{transform_indices = @transform_0, window_bounds = array<i64: 8, 128>}, {transform_indices = @transform_1, window_bounds = array<i64: 8, 128>}, {transform_indices = @transform_2, window_bounds = array<i64: 8, 128>}, {transform_indices = @transform_3, window_bounds = array<i64: 8, 128>}]} {
    %c1_i32 = arith.constant 1 : i32
    %0 = arith.muli %arg0, %c1_i32 : i32
    %1 = arith.addi %0, %arg1 : i32
    %c0_i32 = arith.constant 0 : i32
    %2 = arith.cmpi eq, %arg1, %c0_i32 : i32
    %3 = arith.extui %2 : i1 to i32
    %c0_i32_0 = arith.constant 0 : i32
    %4 = arith.cmpi ne, %3, %c0_i32_0 : i32
    scf.if %4 {
      %cst_17 = arith.constant 0.000000e+00 : f32
      %45 = vector.broadcast %cst_17 : f32 to vector<1x1xf32>
      %c0_18 = arith.constant 0 : index
      %c0_19 = arith.constant 0 : index
      %46 = vector.load %arg6[%c0_18, %c0_19] : memref<1x1xf32, #tpu.memory_space<vmem>>, vector<1x1xf32>
      tpu.vector_store %arg6[%c0_18, %c0_19], %45 {strides = array<i32>} : memref<1x1xf32, #tpu.memory_space<vmem>>, vector<1x1xf32>,
      %cst_20 = arith.constant 0.000000e+00 : f32
      %47 = vector.broadcast %cst_20 : f32 to vector<8x128xf32>
      %c0_21 = arith.constant 0 : index
      %c0_22 = arith.constant 0 : index
      %48 = vector.load %arg5[%c0_21, %c0_22] : memref<8x128xf32, #tpu.memory_space<vmem>>, vector<8x128xf32>
      tpu.vector_store %arg5[%c0_21, %c0_22], %47 {strides = array<i32>} : memref<8x128xf32, #tpu.memory_space<vmem>>, vector<8x128xf32>,
    } else {
    }
    %c0 = arith.constant 0 : index
    %c0_1 = arith.constant 0 : index
    %5 = vector.load %arg2[%c0, %c0_1] : memref<8x128xf32, #tpu.memory_space<vmem>>, vector<8x128xf32>
    %c0_2 = arith.constant 0 : index
    %c0_3 = arith.constant 0 : index
    %6 = vector.load %arg3[%c0_2, %c0_3] : memref<8x128xf32, #tpu.memory_space<vmem>>, vector<8x128xf32>
    %c0_4 = arith.constant 0 : index
    %c0_5 = arith.constant 0 : index
    %7 = vector.load %arg4[%c0_4, %c0_5] : memref<8x128xf32, #tpu.memory_space<vmem>>, vector<8x128xf32>
    %cst = arith.constant 9.99999997E-7 : f32
    %8 = vector.broadcast %cst : f32 to vector<8x128xf32>
    %9 = arith.addf %5, %8 : vector<8x128xf32>
    %10 = arith.subf %9, %6 : vector<8x128xf32>
    %11 = arith.subf %9, %7 : vector<8x128xf32>
    %12 = arith.mulf %10, %10 : vector<8x128xf32>
    %13 = arith.mulf %11, %11 : vector<8x128xf32>
    %14 = tpu.iota {dimensions = array<i32: 0>} : vector<128x4xi32>
    %15 = tpu.iota {dimensions = array<i32: 1>} : vector<128x4xi32>
    %c32_i32 = arith.constant 32 : i32
    %16 = vector.broadcast %c32_i32 : i32 to vector<128x4xi32>
    %17 = arith.muli %15, %16 : vector<128x4xi32>
    %18 = arith.cmpi sge, %14, %17 : vector<128x4xi32>
    %c32_i32_6 = arith.constant 32 : i32
    %19 = vector.broadcast %c32_i32_6 : i32 to vector<128x4xi32>
    %20 = arith.addi %17, %19 : vector<128x4xi32>
    %21 = arith.cmpi slt, %14, %20 : vector<128x4xi32>
    %22 = arith.andi %18, %21 : vector<128x4xi1>
    %23 = arith.extui %22 : vector<128x4xi1> to vector<128x4xi32>
    %24 = arith.sitofp %23 : vector<128x4xi32> to vector<128x4xf32>
    %cst_7 = arith.constant dense<0.000000e+00> : vector<8x4xf32>
    %25 = tpu.matmul %12, %24, %cst_7 {dimension_numbers = #tpu.dot_dimension_numbers<[1], [0], [0], [1], [0, 0, 1, 1], [], []>} : vector<8x128xf32>, vector<128x4xf32>, vector<8x4xf32> -> vector<8x4xf32>
    %cst_8 = arith.constant dense<0.000000e+00> : vector<8x4xf32>
    %26 = tpu.matmul %13, %24, %cst_8 {dimension_numbers = #tpu.dot_dimension_numbers<[1], [0], [0], [1], [0, 0, 1, 1], [], []>} : vector<8x128xf32>, vector<128x4xf32>, vector<8x4xf32> -> vector<8x4xf32>
    %27 = math.sqrt %25 : vector<8x4xf32>
    %28 = math.sqrt %26 : vector<8x4xf32>
    %29 = arith.subf %27, %28 : vector<8x4xf32>
    %cst_9 = arith.constant 1.000000e+00 : f32
    %30 = vector.broadcast %cst_9 : f32 to vector<8x4xf32>
    %31 = arith.addf %29, %30 : vector<8x4xf32>
    %cst_10 = arith.constant 0.000000e+00 : f32
    %32 = vector.broadcast %cst_10 : f32 to vector<8x4xf32>
    %33 = arith.maximumf %31, %32 : vector<8x4xf32>
    %c1_i32_11 = arith.constant 1 : i32
    %34 = arith.addi %1, %c1_i32_11 : i32
    %c32_i32_12 = arith.constant 32 : i32
    %35 = arith.muli %34, %c32_i32_12 : i32
    %c8_i32 = arith.constant 8 : i32
    %36 = arith.cmpi sgt, %35, %c8_i32 : i32
    %37 = arith.extui %36 : i1 to i32
    %c0_i32_13 = arith.constant 0 : i32
    %38 = arith.cmpi ne, %37, %c0_i32_13 : i32
    scf.if %38 {
      %45 = tpu.iota {dimensions = array<i32: 0>} : vector<8x4xi32>
      %46 = tpu.iota {dimensions = array<i32: 1>} : vector<8x4xi32>
      %c8_i32_17 = arith.constant 8 : i32
      %47 = arith.muli %1, %c8_i32_17 : i32
      %48 = vector.broadcast %47 : i32 to vector<8x4xi32>
      %49 = arith.addi %48, %45 : vector<8x4xi32>
      %c4_i32 = arith.constant 4 : i32
      %50 = vector.broadcast %c4_i32 : i32 to vector<8x4xi32>
      %51 = arith.muli %49, %50 : vector<8x4xi32>
      %52 = arith.addi %51, %46 : vector<8x4xi32>
      %c8_i32_18 = arith.constant 8 : i32
      %53 = vector.broadcast %c8_i32_18 : i32 to vector<8x4xi32>
      %54 = arith.cmpi slt, %52, %53 : vector<8x4xi32>
      %cst_19 = arith.constant 0.000000e+00 : f32
      %55 = vector.broadcast %cst_19 : f32 to vector<8x4xf32>
      %56 = arith.select %54, %33, %55 : vector<8x4xi1>, vector<8x4xf32>
      %c0_20 = arith.constant 0 : index
      %c0_21 = arith.constant 0 : index
      %57 = vector.load %arg6[%c0_20, %c0_21] : memref<1x1xf32, #tpu.memory_space<vmem>>, vector<1x1xf32>
      %58 = vector.shape_cast %56 : vector<8x4xf32> to vector<1x8x4xf32>
      %cst_22 = arith.constant dense<0.000000e+00> : vector<1xf32>
      %59 = vector.multi_reduction <add>, %58, %cst_22 [1, 2] : vector<1x8x4xf32> to vector<1xf32>
      %60 = vector.shape_cast %59 : vector<1xf32> to vector<1x1x1xf32>
      %61 = vector.extract %60[0, 0, 0] : f32 from vector<1x1x1xf32>
      %62 = vector.broadcast %61 : f32 to vector<1x1xf32>
      %63 = arith.addf %57, %62 : vector<1x1xf32>
      %c0_23 = arith.constant 0 : index
      %c0_24 = arith.constant 0 : index
      %64 = vector.load %arg6[%c0_23, %c0_24] : memref<1x1xf32, #tpu.memory_space<vmem>>, vector<1x1xf32>
      tpu.vector_store %arg6[%c0_23, %c0_24], %63 {strides = array<i32>} : memref<1x1xf32, #tpu.memory_space<vmem>>, vector<1x1xf32>,
    } else {
    }
    %true = arith.constant true
    %39 = arith.xori %36, %true : i1
    %40 = arith.extui %39 : i1 to i32
    %c0_i32_14 = arith.constant 0 : i32
    %41 = arith.cmpi ne, %40, %c0_i32_14 : i32
    scf.if %41 {
      %c0_17 = arith.constant 0 : index
      %c0_18 = arith.constant 0 : index
      %45 = vector.load %arg6[%c0_17, %c0_18] : memref<1x1xf32, #tpu.memory_space<vmem>>, vector<1x1xf32>
      %46 = vector.shape_cast %33 : vector<8x4xf32> to vector<1x8x4xf32>
      %cst_19 = arith.constant dense<0.000000e+00> : vector<1xf32>
      %47 = vector.multi_reduction <add>, %46, %cst_19 [1, 2] : vector<1x8x4xf32> to vector<1xf32>
      %48 = vector.shape_cast %47 : vector<1xf32> to vector<1x1x1xf32>
      %49 = vector.extract %48[0, 0, 0] : f32 from vector<1x1x1xf32>
      %50 = vector.broadcast %49 : f32 to vector<1x1xf32>
      %51 = arith.addf %45, %50 : vector<1x1xf32>
      %c0_20 = arith.constant 0 : index
      %c0_21 = arith.constant 0 : index
      %52 = vector.load %arg6[%c0_20, %c0_21] : memref<1x1xf32, #tpu.memory_space<vmem>>, vector<1x1xf32>
      tpu.vector_store %arg6[%c0_20, %c0_21], %51 {strides = array<i32>} : memref<1x1xf32, #tpu.memory_space<vmem>>, vector<1x1xf32>,
    } else {
    }
    %c0_i32_15 = arith.constant 0 : i32
    %42 = arith.cmpi eq, %arg1, %c0_i32_15 : i32
    %43 = arith.extui %42 : i1 to i32
    %c0_i32_16 = arith.constant 0 : i32
    %44 = arith.cmpi ne, %43, %c0_i32_16 : i32
    scf.if %44 {
      %c0_17 = arith.constant 0 : index
      %c0_18 = arith.constant 0 : index
      %45 = vector.load %arg5[%c0_17, %c0_18] : memref<8x128xf32, #tpu.memory_space<vmem>>, vector<8x128xf32>
      %c0_19 = arith.constant 0 : index
      %c0_20 = arith.constant 0 : index
      %46 = vector.load %arg6[%c0_19, %c0_20] : memref<1x1xf32, #tpu.memory_space<vmem>>, vector<1x1xf32>
      %47 = vector.broadcast %46 : vector<1x1xf32> to vector<8x128xf32>
      %48 = arith.addf %45, %47 : vector<8x128xf32>
      %c0_21 = arith.constant 0 : index
      %c0_22 = arith.constant 0 : index
      %49 = vector.load %arg5[%c0_21, %c0_22] : memref<8x128xf32, #tpu.memory_space<vmem>>, vector<8x128xf32>
      tpu.vector_store %arg5[%c0_21, %c0_22], %48 {strides = array<i32>} : memref<8x128xf32, #tpu.memory_space<vmem>>, vector<8x128xf32>,
    } else {
    }
    return
  }
  func.func @transform_0(%arg0: i32, %arg1: i32) -> (i32, i32) {
    %c1_i32 = arith.constant 1 : i32
    %0 = arith.muli %arg0, %c1_i32 : i32
    %1 = arith.addi %0, %arg1 : i32
    %c0_i32 = arith.constant 0 : i32
    %2 = arith.minsi %1, %c0_i32 : i32
    %c0_i32_0 = arith.constant 0 : i32
    %c0_i32_1 = arith.constant 0 : i32
    return %2, %c0_i32_0 : i32, i32
  }
  func.func @transform_1(%arg0: i32, %arg1: i32) -> (i32, i32) {
    %c1_i32 = arith.constant 1 : i32
    %0 = arith.muli %arg0, %c1_i32 : i32
    %1 = arith.addi %0, %arg1 : i32
    %c0_i32 = arith.constant 0 : i32
    %2 = arith.minsi %1, %c0_i32 : i32
    %c0_i32_0 = arith.constant 0 : i32
    %c0_i32_1 = arith.constant 0 : i32
    return %2, %c0_i32_0 : i32, i32
  }
  func.func @transform_2(%arg0: i32, %arg1: i32) -> (i32, i32) {
    %c1_i32 = arith.constant 1 : i32
    %0 = arith.muli %arg0, %c1_i32 : i32
    %1 = arith.addi %0, %arg1 : i32
    %c0_i32 = arith.constant 0 : i32
    %2 = arith.minsi %1, %c0_i32 : i32
    %c0_i32_0 = arith.constant 0 : i32
    %c0_i32_1 = arith.constant 0 : i32
    return %2, %c0_i32_0 : i32, i32
  }
  func.func @transform_3(%arg0: i32, %arg1: i32) -> (i32, i32) {
    %c0_i32 = arith.constant 0 : i32
    %c0_i32_0 = arith.constant 0 : i32
    return %arg0, %c0_i32 : i32, i32
  }
}

</mosaic_0001>

<bundles_post_ra>
// kernel: tpu_custom_call.1
= control target key start
LH: loop header
LB: loop body
LE: loop exit
PB: predicated region body
PF: predicated region fallthrough
CT: control target
= control target key end

     0   :  { %8 = vsyncpa [#allocation4], 0  ;;  %s984_s0 = inlined_call_operand.hbm [shape: f32[8,128], index: 0, kind: input, shape index: {}]   ;;  %s985_s1 = inlined_call_operand.hbm [shape: f32[8,128], index: 1, kind: input, shape index: {}]   ;;  %s986_s2 = inlined_call_operand.hbm [shape: f32[8,128], index: 2, kind: input, shape index: {}]   ;;  %s987_s3 = inlined_call_operand.hbm [shape: f32[8,128], index: 3, kind: output, shape index: {}]  }
   0x1   :  { %9 = vsyncpa [#allocation7], 0 }
   0x2   :  { %10 = vsyncpa [#allocation5], 0  ;;  %s746_s12 = smov [#allocation6]   ;;  %s747_s14 = smov [#allocation3]  }
   0x3   :  { %s37_s13 = sshll.u32 %s746_s12, 4  ;;  %s22_s15 = sshll.u32 %s747_s14, 4  ;;  %s38_s13 = int_to_ptr.vmem [resolvable:$true] %s37_s13  ;;  %s23_s15 = int_to_ptr.vmem [resolvable:$true] %s22_s15 }
   0x4   :  { %s652_s18 = scalar_lea.hbm %s985_s1, 128 }
   0x5   :  { %p653_p0 = scmp.ne.s32.totalorder %s985_s1, %s652_s18  ;;  %p656_p1 = scmp.lt.u32.totalorder %s652_s18, %s985_s1 }
   0x7   :  { %p658_p2 = pnand %p656_p1, %p653_p0 }
   0x9   :  { %661 = shalt.err (!%p658_p2)
}
   0xa   :  { %s662_s23 = scalar_lea.vmem %s38_s13, 128  ;;  %p667_p4 = scmp.lt.s32.totalorder %s38_s13, %s38_s13 }
   0xb   :  { %p663_p3 = scmp.ne.s32.totalorder %s38_s13, %s662_s23  ;;  %p668_p5 = scmp.lt.s32.totalorder %s662_s23, %s662_s23 }
   0xd   :  { %p669_p6 = por %p668_p5, %p667_p4 }
   0xf   :  { %p670_p7 = pnand %p669_p6, %p663_p3 }
  0x11   :  { %673 = shalt.err (!%p670_p7)
}
  0x12   :  { %40 = dma.hbm_to_vmem [thread:$0]  %s985_s1, 128, %s38_s13, [#allocation7]  }
  0x13   :  { %s674_s28 = scalar_lea.hbm %s984_s0, 128 }
  0x14   :  { %p675_p8 = scmp.ne.s32.totalorder %s984_s0, %s674_s28  ;;  %p678_p9 = scmp.lt.u32.totalorder %s674_s28, %s984_s0 }
  0x16   :  { %p680_p10 = pnand %p678_p9, %p675_p8 }
  0x18   :  { %683 = shalt.err (!%p680_p10)
}
  0x19   :  { %s684_s6 = scalar_lea.vmem %s23_s15, 128  ;;  %p689_p12 = scmp.lt.s32.totalorder %s23_s15, %s23_s15 }
  0x1a   :  { %p685_p11 = scmp.ne.s32.totalorder %s23_s15, %s684_s6  ;;  %p690_p13 = scmp.lt.s32.totalorder %s684_s6, %s684_s6 }
  0x1c   :  { %p691_p0 = por %p690_p13, %p689_p12 }
  0x1e   :  { %p692_p1 = pnand %p691_p0, %p685_p11 }
  0x20   :  { %695 = shalt.err (!%p692_p1)
}
  0x21   :  { %25 = dma.hbm_to_vmem [thread:$0]  %s984_s0, 128, %s23_s15, [#allocation4]  }
  0x22   :  { %s748_s8 = smov [#allocation8]   ;;  %s696_s12 = scalar_lea.hbm %s986_s2, 128 }
  0x23   :  { %s52_s9 = sshll.u32 %s748_s8, 4  ;;  %p697_p2 = scmp.ne.s32.totalorder %s986_s2, %s696_s12  ;;  %s53_s9 = int_to_ptr.vmem [resolvable:$true] %s52_s9 }
  0x24   :  { %p700_p3 = scmp.lt.u32.totalorder %s696_s12, %s986_s2 }
  0x26   :  { %p702_p4 = pnand %p700_p3, %p697_p2 }
  0x28   :  { %705 = shalt.err (!%p702_p4)
}
  0x29   :  { %s706_s18 = scalar_lea.vmem %s53_s9, 128  ;;  %p711_p6 = scmp.lt.s32.totalorder %s53_s9, %s53_s9 }
  0x2a   :  { %p707_p5 = scmp.ne.s32.totalorder %s53_s9, %s706_s18  ;;  %p712_p7 = scmp.lt.s32.totalorder %s706_s18, %s706_s18 }
  0x2c   :  { %p713_p8 = por %p712_p7, %p711_p6 }
  0x2e   :  { %p714_p9 = pnand %p713_p8, %p707_p5 }
  0x30   :  { %717 = shalt.err (!%p714_p9)
}
  0x31   :  { %55 = dma.hbm_to_vmem [thread:$0]  %s986_s2, 128, %s53_s9, [#allocation7]  }
  0x32   :  { %740 = dma.done.wait [#allocation4], 128  }
  0x33   :  { %741 = vsyncadd [#allocation4], 4294967168  ;;  %v90_v0 = vlaneseq }
  0x34   :  { %742 = dma.done.wait [#allocation7], 256  }
  0x35   :  { %743 = vsyncadd [#allocation7], 4294967040  ;;  %vm79_vm0 = vcmask 0   ;;  %v749_v1 = vmov 0.0|0.0   ;;  %v813_v2 = vshrl.u32 %v90_v0, 7  ;;  %v815_v3 = vand.u32 127, %v90_v0 }
  0x36   :  { %588 = vmatprep.subr.bf16.mxu0 %v749_v1  ;;  %612 = vmatprep.subr.bf16.mxu1 %v749_v1  ;;  %v750_v4 = vmov 0.0   ;;  %vm751_vm1 = vmmov 0   ;;  %v752_v13 = vmov 1.0|1.0   ;;  %v82_v33 = vld [vmem:[#allocation3] sm:$0xff]  ;;  %v83_v36 = vld [vmem:[#allocation6] sm:$0xff] }
  0x37   :  { %80 = vst.msk [vmem:[#allocation2] sm:$0x1] %vm79_vm0, %v750_v4  ;;  %550 = vmatprep.mubr.msk.f32.mxu0 %vm751_vm1, %v750_v4  ;;  %585 = vmatprep.mubr.msk.f32.mxu1 %vm751_vm1, %v750_v4  ;;  %v92_v5 = vadd.s32 8, %v813_v2  ;;  %v820_v6 = vmul.u32 32, %v815_v3  ;;  %v93_v7 = vadd.s32 16, %v813_v2  ;;  %v94_v9 = vadd.s32 24, %v813_v2 }
  0x38   :  { %v95_v10 = vadd.s32 32, %v813_v2  ;;  %v96_v11 = vadd.s32 40, %v813_v2  ;;  %v97_v12 = vadd.s32 48, %v813_v2  ;;  %v98_v15 = vadd.s32 56, %v813_v2  ;;  %v84_v37 = vld [vmem:[#allocation8] sm:$0xff]  ;;  %s754_s19 = smov [#allocation9]  }
  0x39   :  { %vm110_vm2 = vcmp.ge.s32.totalorder %v813_v2, %v820_v6  ;;  %v826_v8 = vadd.s32 32, %v820_v6  ;;  %vm111_vm3 = vcmp.ge.s32.totalorder %v92_v5, %v820_v6  ;;  %vm112_vm7 = vcmp.ge.s32.totalorder %v93_v7, %v820_v6  ;;  %s419_s20 = sshll.u32 %s754_s19, 4  ;;  %s420_s20 = int_to_ptr.vmem [resolvable:$true] %s419_s20 }
  0x3a   :  { %vm113_vm10 = vcmp.ge.s32.totalorder %v94_v9, %v820_v6  ;;  %vm114_vm14 = vcmp.ge.s32.totalorder %v95_v10, %v820_v6  ;;  %v99_v16 = vadd.s32 64, %v813_v2  ;;  %v100_v18 = vadd.s32 72, %v813_v2  ;;  %s718_s21 = scalar_lea.vmem %s420_s20, 128  ;;  %p723_p11 = scmp.lt.s32.totalorder %s420_s20, %s420_s20 }
  0x3b   :  { %vm127_vm4 = vcmp.lt.s32.totalorder %v813_v2, %v826_v8  ;;  %vm128_vm5 = vcmp.lt.s32.totalorder %v92_v5, %v826_v8  ;;  %vm129_vm8 = vcmp.lt.s32.totalorder %v93_v7, %v826_v8  ;;  %vm130_vm11 = vcmp.lt.s32.totalorder %v94_v9, %v826_v8  ;;  %p719_p10 = scmp.ne.s32.totalorder %s420_s20, %s718_s21  ;;  %p724_p12 = scmp.lt.s32.totalorder %s718_s21, %s718_s21 }
  0x3c   :  { %vm143_vm6 = vmand %vm110_vm2, %vm127_vm4  ;;  %vm131_vm15 = vcmp.lt.s32.totalorder %v95_v10, %v826_v8  ;;  %vm115_vm2 = vcmp.ge.s32.totalorder %v96_v11, %v820_v6  ;;  %v101_v20 = vadd.s32 80, %v813_v2  ;;  %v102_v22 = vadd.s32 88, %v813_v2 }
  0x3d   :  { %vm144_vm9 = vmand %vm111_vm3, %vm128_vm5  ;;  %vm132_vm3 = vcmp.lt.s32.totalorder %v96_v11, %v826_v8  ;;  %v103_v25 = vadd.s32 96, %v813_v2  ;;  %v104_v27 = vadd.s32 104, %v813_v2  ;;  %v105_v30 = vadd.s32 112, %v813_v2  ;;  %p725_p13 = por %p724_p12, %p723_p11 }
  0x3e   :  { %vm589_vm12 = vmpackc.low %vm144_vm9, %vm143_vm6  ;;  %vm116_vm6 = vcmp.ge.s32.totalorder %v97_v12, %v820_v6  ;;  %vm117_vm9 = vcmp.ge.s32.totalorder %v98_v15, %v820_v6  ;;  %v106_v31 = vadd.s32 120, %v813_v2  ;;  %v85_v35 = vadd.f32 1e-06, %v82_v33 }
  0x3f   :  { %590 = vmatpush3.bf16.msk.msra.mxu0 %vm589_vm12, %v752_v13  ;;  %614 = vmatpush3.bf16.msk.msra.mxu1 %vm589_vm12, %v752_v13  ;;  %vm842_vm13 = vmand %vm112_vm7, %vm129_vm8  ;;  %vm133_vm7 = vcmp.lt.s32.totalorder %v97_v12, %v826_v8  ;;  %v357_v49 = vmul.u32 4, %v813_v2  ;;  %v753_v63 = vmov 0   ;;  %p726_p0 = pnand %p725_p13, %p719_p10 }
  0x40   :  { %591 = vmatprep.subr.bf16.mxu0 %v749_v1  ;;  %615 = vmatprep.subr.bf16.mxu1 %v749_v1  ;;  %vm146_vm1 = vmand %vm113_vm10, %vm130_vm11  ;;  %vm134_vm10 = vcmp.lt.s32.totalorder %v98_v15, %v826_v8  ;;  %v86_v38 = vsub.f32 %v85_v35, %v83_v36  ;;  %v87_v39 = vsub.f32 %v85_v35, %v84_v37 }
  0x41   :  { %vm592_vm4 = vmpackc.low %vm146_vm1, %vm842_vm13  ;;  %vm118_vm13 = vcmp.ge.s32.totalorder %v99_v16, %v820_v6  ;;  %vm119_vm1 = vcmp.ge.s32.totalorder %v100_v18, %v820_v6  ;;  %v358_v57 = vadd.s32 %v357_v49, %v815_v3  ;;  %647 = vset.pattern.permute.xlu0 %v753_v63 }
  0x42   :  { %vm856_vm5 = vmand %vm114_vm14, %vm131_vm15  ;;  %vm135_vm14 = vcmp.lt.s32.totalorder %v99_v16, %v826_v8  ;;  %v88_v40 = vmul.f32 %v86_v38, %v86_v38  ;;  %v89_v41 = vmul.f32 %v87_v39, %v87_v39 }
  0x43   :  { %593 = vmatpush3.bf16.msk.msra.mxu0 %vm592_vm4, %v752_v13  ;;  %617 = vmatpush3.bf16.msk.msra.mxu1 %vm592_vm4, %v752_v13  ;;  %vm865_vm8 = vmand %vm115_vm2, %vm132_vm3  ;;  %vm136_vm2 = vcmp.lt.s32.totalorder %v100_v18, %v826_v8 }
  0x44   :  { %594 = vmatprep.subr.bf16.mxu0 %v749_v1  ;;  %618 = vmatprep.subr.bf16.mxu1 %v749_v1  ;;  %vm595_vm11 = vmpackc.low %vm865_vm8, %vm856_vm5  ;;  %vm120_vm5 = vcmp.ge.s32.totalorder %v101_v20, %v820_v6  ;;  %vm121_vm8 = vcmp.ge.s32.totalorder %v102_v22, %v820_v6 }
  0x45   :  { %vm878_vm12 = vmand %vm116_vm6, %vm133_vm7  ;;  %vm137_vm6 = vcmp.lt.s32.totalorder %v101_v20, %v826_v8 }
  0x46   :  { %vm885_vm15 = vmand %vm117_vm9, %vm134_vm10  ;;  %vm138_vm9 = vcmp.lt.s32.totalorder %v102_v22, %v826_v8 }
  0x47   :  { %596 = vmatpush3.bf16.msk.msra.mxu0 %vm595_vm11, %v752_v13  ;;  %620 = vmatpush3.bf16.msk.msra.mxu1 %vm595_vm11, %v752_v13  ;;  %vm598_vm3 = vmpackc.low %vm885_vm15, %vm878_vm12  ;;  %vm123_vm15 = vcmp.ge.s32.totalorder %v104_v27, %v820_v6 }
  0x48   :  { %597 = vmatprep.subr.bf16.mxu0 %v749_v1  ;;  %621 = vmatprep.subr.bf16.mxu1 %v749_v1  ;;  %vm899_vm4 = vmand %vm118_vm13, %vm135_vm14  ;;  %vm122_vm13 = vcmp.ge.s32.totalorder %v103_v25, %v820_v6  ;;  %vm139_vm14 = vcmp.lt.s32.totalorder %v103_v25, %v826_v8 }
  0x49   :  { %vm906_vm7 = vmand %vm119_vm1, %vm136_vm2  ;;  %vm140_vm1 = vcmp.lt.s32.totalorder %v104_v27, %v826_v8 }
  0x4a   :  { %vm601_vm10 = vmpackc.low %vm906_vm7, %vm899_vm4  ;;  %vm125_vm7 = vcmp.ge.s32.totalorder %v106_v31, %v820_v6 }
  0x4b   :  { %599 = vmatpush3.bf16.msk.msra.mxu0 %vm598_vm3, %v752_v13  ;;  %623 = vmatpush3.bf16.msk.msra.mxu1 %vm598_vm3, %v752_v13  ;;  %vm919_vm11 = vmand %vm120_vm5, %vm137_vm6  ;;  %vm124_vm5 = vcmp.ge.s32.totalorder %v105_v30, %v820_v6  ;;  %vm141_vm6 = vcmp.lt.s32.totalorder %v105_v30, %v826_v8 }
  0x4c   :  { %600 = vmatprep.subr.bf16.mxu0 %v749_v1  ;;  %624 = vmatprep.subr.bf16.mxu1 %v749_v1  ;;  %vm925_vm12 = vmand %vm121_vm8, %vm138_vm9  ;;  %vm142_vm8 = vcmp.lt.s32.totalorder %v106_v31, %v826_v8  ;;  %v361_v8 = vld [vmem:[#allocation2] sm:$0x1] }
  0x4d   :  { %vm604_vm2 = vmpackc.low %vm925_vm12, %vm919_vm11 }
  0x4e   :  { %vm941_vm3 = vmand %vm122_vm13, %vm139_vm14 }
  0x4f   :  { %602 = vmatpush3.bf16.msk.msra.mxu0 %vm601_vm10, %v752_v13  ;;  %626 = vmatpush3.bf16.msk.msra.mxu1 %vm601_vm10, %v752_v13  ;;  %vm947_vm4 = vmand %vm123_vm15, %vm140_vm1 }
  0x50   :  { %603 = vmatprep.subr.bf16.mxu0 %v749_v1  ;;  %627 = vmatprep.subr.bf16.mxu1 %v749_v1  ;;  %vm607_vm9 = vmpackc.low %vm947_vm4, %vm941_vm3  ;;  %vm362_vm3 = vcmask 31744  }
  0x51   :  { %vm157_vm10 = vmand %vm124_vm5, %vm141_vm6 }
  0x52   :  { %vm158_vm11 = vmand %vm125_vm7, %vm142_vm8 }
  0x53   :  { %605 = vmatpush3.bf16.msk.msra.mxu0 %vm604_vm2, %v752_v13  ;;  %629 = vmatpush3.bf16.msk.msra.mxu1 %vm604_vm2, %v752_v13  ;;  %vm610_vm12 = vmpackc.low %vm158_vm11, %vm157_vm10  ;;  %vm359_vm2 = vcmp.lt.s32.totalorder %v358_v57, 8 }
  0x54   :  { %606 = vmatprep.subr.bf16.mxu0 %v749_v1  ;;  %630 = vmatprep.subr.bf16.mxu1 %v749_v1 }
  0x57   :  { %608 = vmatpush3.bf16.msk.msra.mxu0 %vm607_vm9, %v752_v13  ;;  %632 = vmatpush3.bf16.msk.msra.mxu1 %vm607_vm9, %v752_v13 }
  0x58   :  { %609 = vmatprep.subr.bf16.mxu0 %v749_v1  ;;  %633 = vmatprep.subr.bf16.mxu1 %v749_v1 }
  0x5b   :  { %611 = vmatpush3.bf16.msk.msra.mxu0 %vm610_vm12, %v752_v13  ;;  %635 = vmatpush3.bf16.msk.msra.mxu1 %vm610_vm12, %v752_v13 }
  0x5e   :  { %551 = vmatmul.mubr.f32.vlgmr.msra.gmra.mrb[0].mxu0 %v88_v40  ;;  %586 = vmatmul.mubr.f32.vlgmr.msra.gmra.mrb[0].mxu1 %v89_v41 }
 0x131   :  { %v257_v42 = vpop.f32.mrb[0].mxu0  ;;  %v327_v43 = vpop.f32.mrb[0].mxu1 }
 0x132   :  { %648 = vrsqrt.f32 %v257_v42  ;;  %v552_v44 = vpop.f32.mrb[1].mxu0  ;;  %v587_v45 = vpop.f32.mrb[1].mxu1  ;;  %vm333_vm13 = vcmp.eq.f32.partialorder %v257_v42, inf  ;;  %v336_v50 = vand.u32 2147483648, %v257_v42  ;;  %vm335_vm14 = vcmp.eq.f32.partialorder %v257_v42, 0.0 }
 0x133   :  { %650 = vrsqrt.f32 %v327_v43  ;;  %vm340_vm15 = vcmp.eq.f32.partialorder %v327_v43, inf  ;;  %v343_v53 = vand.u32 2147483648, %v327_v43  ;;  %vm342_vm1 = vcmp.eq.f32.partialorder %v327_v43, 0.0 }
 0x13c   :  { %v649_v46 = vpop.eup %648 }
 0x13d   :  { %v651_v47 = vpop.eup %650  ;;  %v332_v48 = vmul.f32 %v649_v46, %v257_v42 }
 0x13e   :  { %v339_v51 = vmul.f32 %v651_v47, %v327_v43 }
 0x13f   :  { %v334_v52 = vsel %vm333_vm13, %v257_v42, %v332_v48 }
 0x140   :  { %v337_v54 = vsel %vm335_vm14, %v336_v50, %v334_v52  ;;  %v341_v55 = vsel %vm340_vm15, %v327_v43, %v339_v51 }
 0x141   :  { %v344_v56 = vsel %vm342_vm1, %v343_v53, %v341_v55 }
 0x142   :  { %v345_v58 = vsub.f32 %v337_v54, %v344_v56 }
 0x144   :  { %v346_v59 = vadd.f32 1.0, %v345_v58 }
 0x146   :  { %v347_v60 = vmax.f32 %v346_v59, 0.0 }
 0x148   :  { %v360_v61 = vsel %vm359_vm2, %v347_v60, 0.0 }
 0x149   :  { %v363_v62 = vsel %vm362_vm3, %v360_v61, 0.0 }
 0x14a   :  { %364 = vadd.xlane.f32.xlu0 %v363_v62 }
 0x1d7   :  { %v365_v0 = vpop.xlane.xlu0 %364 }
 0x1d8   :  { %v366_v1 = vrot.slane %v365_v0, 4 }
 0x1da   :  { %v367_v2 = vadd.f32 %v366_v1, %v365_v0 }
 0x1dc   :  { %v368_v4 = vrot.slane %v367_v2, 2 }
 0x1de   :  { %v369_v5 = vadd.f32 %v368_v4, %v367_v2 }
 0x1e0   :  { %v370_v6 = vrot.slane %v369_v5, 1 }
 0x1e2   :  { %v371_v7 = vadd.f32 %v370_v6, %v369_v5 }
 0x1e4   :  { %636 = vpush %v371_v7 }
 0x215   :  { %s637_s2 = spop %636 }
 0x216   :  { %v373_v3 = vstv %s637_s2 }
 0x217   :  { %v374_v9 = vadd.f32 %v373_v3, %v361_v8 }
 0x219   :  { %376 = vst.msk [vmem:[#allocation2] sm:$0x1] %vm79_vm0, %v374_v9 }
 0x220   :  { %v483_v10 = vld [vmem:[#allocation2] ss:$0 sm:$0xff] }
 0x221   :  { %408 = vperm.xlu0 %647, %v483_v10  }
 0x2a0   :  { %v409_v11 = vpop.permute.xlu0 %408 }
 0x2a1   :  { %412 = vst [vmem:[#allocation9] sm:$0xff] %v409_v11 }
 0x2a2   :  { %729 = shalt.err (!%p726_p0)
}
 0x2a3   :  { %s730_s24 = scalar_lea.hbm %s987_s3, 128 }
 0x2a4   :  { %p731_p1 = scmp.ne.s32.totalorder %s987_s3, %s730_s24  ;;  %p734_p2 = scmp.lt.u32.totalorder %s730_s24, %s987_s3 }
 0x2a6   :  { %p736_p3 = pnand %p734_p2, %p731_p1 }
 0x2a8   :  { %739 = shalt.err (!%p736_p3)
}
 0x2a9   :  { %422 = dma.vmem_to_hbm [thread:$0]  %s420_s20, 128, %s987_s3, [#allocation5]  }
 0x2aa   :  { %744 = dma.done.wait [#allocation5], 128  }
 0x2ab   :  { %745 = vsyncadd [#allocation5], 4294967168 }
 0x2ac   :  { %426 = vsyncpa [#allocation4], 1 }
 0x2ad   :  { %427 = vsyncpa [#allocation7], 1 }
 0x2ae   :  { %428 = vsyncpa [#allocation5], 1 }

</bundles_post_ra>
